<compile_context>
chip_gen: v7x
topology: tpu7x:2x2x1
jax: 0.10.0
libtpu: 0.0.40
codegen_flags: <defaults>
</compile_context>

<pallas_src>
import functools
import math

import numpy as np
import jax
import jax.numpy as jnp
from jax.experimental import pallas as pl
from jax.experimental.pallas import tpu as pltpu


# ----------------------------------------------------------------------------
# Tile helpers
# ----------------------------------------------------------------------------
def _pick_tile(dim, target):
    """Largest divisor of dim <= target, preferring MXU/layout friendly sizes."""
    if dim <= target:
        return dim
    for align in (256, 128, 64, 32, 16, 8):
        t = (target // align) * align
        while t >= align:
            if dim % t == 0:
                return t
            t -= align
    # TODO(synk): pad M to a tile multiple instead of falling back to the full dim.
    return dim


def _pick_window_batch(n_windows, target=8):
    """Largest divisor of n_windows <= target (windows batched per grid step).

    target=8 keeps the attention working set modest for v7x's 64 MiB VMEM while
    still amortizing per-step overhead; raise on v5e/v6e if attention-bound.
    """
    wb = 1
    for d in range(1, min(n_windows, target) + 1):
        if n_windows % d == 0:
            wb = d
    return wb


# ----------------------------------------------------------------------------
# Linear (matmul) kernels
# ----------------------------------------------------------------------------
def _linear_small_kernel(x_ref, w_ref, b_ref, o_ref, *, act):
    # Single full-K, full-N block; weight is resident (constant index map).
    y = jnp.dot(x_ref[...], w_ref[...], preferred_element_type=jnp.float32)
    y = y + b_ref[...].astype(jnp.float32)
    if act == "gelu":
        # TODO(synk): timm's Mlp uses exact (erf) GELU; tanh approximation used here.
        y = jax.nn.gelu(y, approximate=True)
    o_ref[...] = y.astype(o_ref.dtype)


def _linear_tiled_kernel(x_ref, w_ref, b_ref, o_ref, acc_ref, *, act):
    @pl.when(pl.program_id(2) == 0)
    def _():
        acc_ref[...] = jnp.zeros_like(acc_ref)

    acc_ref[...] += jnp.dot(x_ref[...], w_ref[...],
                            preferred_element_type=jnp.float32)

    @pl.when(pl.program_id(2) == pl.num_programs(2) - 1)
    def _():
        y = acc_ref[...] + b_ref[...].astype(jnp.float32)
        if act == "gelu":
            y = jax.nn.gelu(y, approximate=True)
        o_ref[...] = y.astype(o_ref.dtype)


def linear(x, w, b=None, act=None, out_dtype=jnp.bfloat16):
    """x: [..., K] @ w: [K, N] + b: [N]. bf16 MXU feeds, f32 accumulation."""
    shp = x.shape
    K = shp[-1]
    N = w.shape[1]
    x2 = x.reshape(-1, K).astype(jnp.bfloat16)
    wb = w.astype(jnp.bfloat16)
    M = x2.shape[0]
    b2 = (jnp.zeros((N,), jnp.float32) if b is None else b.astype(jnp.float32)).reshape(1, N)

    TM = _pick_tile(M, 512)
    # keep >= 2 grid steps when cheap (v7x: 2 TensorCores share "parallel" axes)
    if M // TM < 2 and TM % 2 == 0 and TM >= 256:
        TM //= 2

    # Working-set estimate for the single-pass path: double-buffered x/out tiles,
    # resident bf16 weight, bias.  Budget sized under v7x's 32 MiB default scoped VMEM.
    def _vmem_bytes(tm):
        return 2 * tm * K * 2 + K * N * 2 + 2 * tm * N * 2 + N * 4

    budget = 24 * 1024 * 1024

    if _vmem_bytes(TM) <= budget:
        grid = (M // TM,)
        out = pl.pallas_call(
            functools.partial(_linear_small_kernel, act=act),
            out_shape=jax.ShapeDtypeStruct((M, N), out_dtype),
            grid=grid,
            in_specs=[
                pl.BlockSpec((TM, K), lambda i: (i, 0)),
                pl.BlockSpec((K, N), lambda i: (0, 0)),    # resident weight
                pl.BlockSpec((1, N), lambda i: (0, 0)),     # resident bias
            ],
            out_specs=pl.BlockSpec((TM, N), lambda i: (i, 0)),
            compiler_params=pltpu.CompilerParams(
                dimension_semantics=("parallel",)),
        )(x2, wb, b2)
    else:
        TN = _pick_tile(N, 512)
        TK = _pick_tile(K, 512)
        grid = (M // TM, N // TN, K // TK)
        out = pl.pallas_call(
            functools.partial(_linear_tiled_kernel, act=act),
            out_shape=jax.ShapeDtypeStruct((M, N), out_dtype),
            grid=grid,
            in_specs=[
                pl.BlockSpec((TM, TK), lambda i, j, k: (i, k)),
                pl.BlockSpec((TK, TN), lambda i, j, k: (k, j)),
                pl.BlockSpec((1, TN), lambda i, j, k: (0, j)),
            ],
            out_specs=pl.BlockSpec((TM, TN), lambda i, j, k: (i, j)),
            scratch_shapes=[pltpu.VMEM((TM, TN), jnp.float32)],
            compiler_params=pltpu.CompilerParams(
                dimension_semantics=("parallel", "parallel", "arbitrary")),
        )(x2, wb, b2)
    return out.reshape(shp[:-1] + (N,))


# ----------------------------------------------------------------------------
# LayerNorm kernels (residual add fused)
# ----------------------------------------------------------------------------
def _ln_math(x, g, b, eps):
    mean = jnp.mean(x, axis=-1, keepdims=True)
    var = jnp.mean(jnp.square(x - mean), axis=-1, keepdims=True)
    return (x - mean) * jax.lax.rsqrt(var + eps) * g + b


def _layernorm_kernel(x_ref, g_ref, b_ref, o_ref, *, eps):
    x = x_ref[...].astype(jnp.float32)
    y = _ln_math(x, g_ref[...].astype(jnp.float32), b_ref[...].astype(jnp.float32), eps)
    o_ref[...] = y.astype(o_ref.dtype)


def _layernorm_res_kernel(x_ref, r_ref, g_ref, b_ref, o_ref, *, eps):
    # Fused residual: out = residual + LN(x)   (SwinV2 post-norm layout)
    x = x_ref[...].astype(jnp.float32)
    y = _ln_math(x, g_ref[...].astype(jnp.float32), b_ref[...].astype(jnp.float32), eps)
    o_ref[...] = (r_ref[...].astype(jnp.float32) + y).astype(o_ref.dtype)


def layernorm(x, g, b, eps=1e-5, residual=None, out_dtype=jnp.bfloat16):
    shp = x.shape
    C = shp[-1]
    x2 = x.reshape(-1, C)
    M = x2.shape[0]
    g2 = g.astype(jnp.float32).reshape(1, C)
    b2 = b.astype(jnp.float32).reshape(1, C)

    TM = _pick_tile(M, 512)
    if M // TM < 2 and TM % 2 == 0 and TM >= 16:   # keep v7x's 2 cores busy
        TM //= 2
    grid = (M // TM,)
    row_spec = pl.BlockSpec((TM, C), lambda i: (i, 0))
    vec_spec = pl.BlockSpec((1, C), lambda i: (0, 0))

    if residual is None:
        kern = functools.partial(_layernorm_kernel, eps=eps)
        in_specs = [row_spec, vec_spec, vec_spec]
        args = (x2, g2, b2)
    else:
        kern = functools.partial(_layernorm_res_kernel, eps=eps)
        in_specs = [row_spec, row_spec, vec_spec, vec_spec]
        args = (x2, residual.reshape(-1, C), g2, b2)

    out = pl.pallas_call(
        kern,
        out_shape=jax.ShapeDtypeStruct((M, C), out_dtype),
        grid=grid,
        in_specs=in_specs,
        out_specs=row_spec,
        compiler_params=pltpu.CompilerParams(dimension_semantics=("parallel",)),
    )(*args)
    return out.reshape(shp)


# ----------------------------------------------------------------------------
# Window attention kernel: lane-dense [WB, N, 3C] in -> [WB, N, C] out,
# per-head slicing done in-kernel.
# ----------------------------------------------------------------------------
def _window_attn_kernel(qkv_ref, s_ref, rpb_ref, *rest, num_heads, masked):
    if masked:
        mask_ref, o_ref = rest
        mask = mask_ref[...].astype(jnp.float32)          # (WB, N, N)
    else:
        (o_ref,) = rest
        mask = None

    WB, N, C3 = qkv_ref.shape
    C = C3 // 3
    hd = C // num_heads
    scales = s_ref[...].astype(jnp.float32)               # (1, H)

    for h in range(num_heads):
        q = qkv_ref[:, :, h * hd:(h + 1) * hd].astype(jnp.float32)
        k = qkv_ref[:, :, C + h * hd:C + (h + 1) * hd].astype(jnp.float32)

        # SwinV2 cosine attention: normalized q @ normalized k^T (rsqrt -> EUP)
        qn = q * jax.lax.rsqrt(jnp.maximum(jnp.sum(q * q, axis=-1, keepdims=True), 1e-12))
        kn = k * jax.lax.rsqrt(jnp.maximum(jnp.sum(k * k, axis=-1, keepdims=True), 1e-12))
        # fold per-head clamped logit scale into q (N*D elems instead of N*N logits)
        qn = qn * scales[0, h]

        attn = jnp.einsum("bnd,bmd->bnm",
                          qn.astype(jnp.bfloat16), kn.astype(jnp.bfloat16),
                          preferred_element_type=jnp.float32)     # (WB, N, N)
        attn = attn + rpb_ref[h][None]                            # relative position bias
        if masked:
            attn = attn + mask                                    # shift mask

        attn = attn - jnp.max(attn, axis=-1, keepdims=True)
        p = jnp.exp(attn)
        p = p * pl.reciprocal(jnp.sum(p, axis=-1, keepdims=True), approx=True)

        v = qkv_ref[:, :, 2 * C + h * hd:2 * C + (h + 1) * hd]
        out = jnp.einsum("bnm,bmd->bnd",
                         p.astype(jnp.bfloat16), v.astype(jnp.bfloat16),
                         preferred_element_type=jnp.float32)
        o_ref[:, :, h * hd:(h + 1) * hd] = out.astype(o_ref.dtype)


def window_attention(qkv, scale, rpb, mask, n_windows, num_heads):
    """qkv: [BW, N, 3C] (lane-dense, bf16); scale: [1,H]; rpb: [H,N,N];
    mask: [nW,N,N] or None.  Returns [BW, N, C] (head-merged, lane-dense)."""
    BW, N, C3 = qkv.shape
    C = C3 // 3
    WB = _pick_window_batch(n_windows)
    grid = (BW // WB,)

    kern = functools.partial(_window_attn_kernel, num_heads=num_heads,
                             masked=mask is not None)
    in_specs = [
        pl.BlockSpec((WB, N, C3), lambda i: (i, 0, 0)),
        pl.BlockSpec((1, num_heads), lambda i: (0, 0)),            # resident
        pl.BlockSpec((num_heads, N, N), lambda i: (0, 0, 0)),      # resident
    ]
    args = [qkv, scale, rpb]
    if mask is not None:
        n_mask_blocks = n_windows // WB
        in_specs.append(pl.BlockSpec((WB, N, N),
                                     lambda i: (i % n_mask_blocks, 0, 0)))
        args.append(mask)

    return pl.pallas_call(
        kern,
        out_shape=jax.ShapeDtypeStruct((BW, N, C), qkv.dtype),
        grid=grid,
        in_specs=in_specs,
        out_specs=pl.BlockSpec((WB, N, C), lambda i: (i, 0, 0)),
        compiler_params=pltpu.CompilerParams(dimension_semantics=("parallel",)),
    )(*args)


# ----------------------------------------------------------------------------
# SwinV2 parameter-side precompute (once per shape): rel-pos bias, shift masks
# ----------------------------------------------------------------------------
def relative_position_bias(p, ws, num_heads):
    rc = np.arange(-(ws - 1), ws, dtype=np.float32)
    table = np.stack(np.meshgrid(rc, rc, indexing="ij"), axis=-1)  # (2w-1, 2w-1, 2)
    if ws > 1:
        table = table / (ws - 1)
    table = table * 8.0
    table = np.sign(table) * np.log2(np.abs(table) + 1.0) / np.log2(8.0)
    t = jnp.asarray(table.reshape(-1, 2))
    h = jax.nn.relu(t @ p["cpb_w1"] + p["cpb_b1"])
    tbl = h @ p["cpb_w2"]  # [(2w-1)^2, heads]

    coords = np.stack(np.meshgrid(np.arange(ws), np.arange(ws), indexing="ij"), 0).reshape(2, -1)
    rel = coords[:, :, None] - coords[:, None, :] + (ws - 1)
    idx = (rel[0] * (2 * ws - 1) + rel[1]).reshape(-1)
    N = ws * ws
    rpb = tbl[idx].reshape(N, N, num_heads).transpose(2, 0, 1)
    return (16.0 * jax.nn.sigmoid(rpb)).astype(jnp.float32)  # [heads, N, N]


def shift_attn_mask(H, W, ws, sh):
    img = np.zeros((H, W), dtype=np.float32)
    cnt = 0
    for hsl in (slice(0, -ws), slice(-ws, -sh), slice(-sh, None)):
        for wsl in (slice(0, -ws), slice(-ws, -sh), slice(-sh, None)):
            img[hsl, wsl] = cnt
            cnt += 1
    win = img.reshape(H // ws, ws, W // ws, ws).transpose(0, 2, 1, 3).reshape(-1, ws * ws)
    diff = win[:, None, :] - win[:, :, None]
    return jnp.asarray(np.where(diff != 0, -100.0, 0.0).astype(np.float32))  # [nW, N, N]


def prepare_derived(params, cfg, img_hw):
    """Hoisted, input-independent per-block quantities (computed once)."""
    H = img_hw[0] // cfg["patch"]
    W = img_hw[1] // cfg["patch"]
    derived = []
    for si, stage in enumerate(params["stages"]):
        if si > 0:
            H, W = H // 2, W // 2
        heads = cfg["heads"][si]
        blocks = []
        for bi, blk in enumerate(stage["blocks"]):
            ws = min(cfg["window"], H, W)
            sh = 0 if (bi % 2 == 0 or min(H, W) <= cfg["window"]) else cfg["window"] // 2
            rpb = relative_position_bias(blk, ws, heads)                 # [heads,N,N]
            mask = shift_attn_mask(H, W, ws, sh) if sh > 0 else None     # [nW,N,N]
            qkv_bias = jnp.concatenate(
                [blk["q_bias"], jnp.zeros_like(blk["v_bias"]), blk["v_bias"]])
            scale = jnp.exp(jnp.minimum(blk["logit_scale"],
                                        math.log(1.0 / 0.01))).reshape(1, heads).astype(jnp.float32)
            blocks.append(dict(ws=ws, sh=sh, rpb=rpb, mask=mask,
                               qkv_bias=qkv_bias, scale=scale))
        derived.append(blocks)
    return derived


_BF16_WEIGHT_KEYS = ("w", "qkv_w", "proj_w", "fc1_w", "fc2_w", "red_w")


def cast_matmul_weights(tree):
    """Convert matmul weights to bf16 once (halves weight HBM traffic; biases/LN stay f32)."""
    if isinstance(tree, dict):
        return {k: (v.astype(jnp.bfloat16) if k in _BF16_WEIGHT_KEYS and not isinstance(v, (dict, list))
                    else cast_matmul_weights(v)) for k, v in tree.items()}
    if isinstance(tree, list):
        return [cast_matmul_weights(v) for v in tree]
    return tree


# ----------------------------------------------------------------------------
# SwinV2 blocks / stages (window partitioning glue stays in XLA)
# ----------------------------------------------------------------------------
def swin_block(x, p, d, num_heads):
    B, H, W, C = x.shape
    ws, sh = d["ws"], d["sh"]
    nh, nw = H // ws, W // ws
    nW = nh * nw
    N = ws * ws
    shortcut = x

    # TODO(synk): fold the window partition / reverse transposes (and the shift roll)
    # into the qkv/proj linear BlockSpec index maps to save two more HBM round trips.
    xs = jnp.roll(x, shift=(-sh, -sh), axis=(1, 2)) if sh > 0 else x
    xw = xs.reshape(B, nh, ws, nw, ws, C).transpose(0, 1, 3, 2, 4, 5).reshape(B * nW, N, C)

    qkv = linear(xw, p["qkv_w"], d["qkv_bias"])                        # [BW, N, 3C]
    ao = window_attention(qkv, d["scale"], d["rpb"], d["mask"], nW, num_heads)  # [BW, N, C]
    ao = linear(ao, p["proj_w"], p["proj_b"])

    xr = ao.reshape(B, nh, nw, ws, ws, C).transpose(0, 1, 3, 2, 4, 5).reshape(B, H, W, C)
    if sh > 0:
        xr = jnp.roll(xr, shift=(sh, sh), axis=(1, 2))

    # SwinV2 post-norm residual layout (residual add fused into LN kernel)
    x = layernorm(xr, p["norm1_g"], p["norm1_b"], residual=shortcut)
    y = linear(x, p["fc1_w"], p["fc1_b"], act="gelu")
    y = linear(y, p["fc2_w"], p["fc2_b"])
    # TODO(synk): fuse this LN (+ residual) into the fc2 finalize when N is untiled.
    x = layernorm(y, p["norm2_g"], p["norm2_b"], residual=x)
    return x


def patch_merging(x, p):
    B, H, W, C = x.shape
    x = (x.reshape(B, H // 2, 2, W // 2, 2, C)
          .transpose(0, 1, 3, 4, 2, 5)
          .reshape(B, H // 2, W // 2, 4 * C))
    x = linear(x, p["red_w"])                     # Linear(4C -> 2C), no bias
    x = layernorm(x, p["ln_g"], p["ln_b"])        # post-norm
    return x


def backbone_forward(x, params, cfg, derived):
    """x: NCHW [B,3,H,W] -> tuple of 4 NCHW feature maps (f32)."""
    B, Cin, H, W = x.shape
    ps = cfg["patch"]
    ph, pw = H // ps, W // ps
    # patch embed: Conv2d(k=4, s=4) == unfold + matmul (matmul runs in the Pallas linear kernel)
    xp = (x.reshape(B, Cin, ph, ps, pw, ps)
           .transpose(0, 2, 4, 1, 3, 5)
           .reshape(B, ph, pw, Cin * ps * ps))
    t = linear(xp, params["patch_embed"]["w"], params["patch_embed"]["b"])
    t = layernorm(t, params["patch_embed"]["ln_g"], params["patch_embed"]["ln_b"])

    feats = []
    for si, stage in enumerate(params["stages"]):
        if si > 0:
            t = patch_merging(t, stage["downsample"])
        for bi, blk in enumerate(stage["blocks"]):
            t = swin_block(t, blk, derived[si][bi], cfg["heads"][si])
        feats.append(t)

    # features_only gives NHWC maps; Backbone.forward permutes to NCHW
    return tuple(jnp.transpose(f, (0, 3, 1, 2)).astype(jnp.float32) for f in feats)


# ----------------------------------------------------------------------------
# Deterministic parameter init (synthetic; no checkpoint loading)
# ----------------------------------------------------------------------------
def init_params(key, cfg):
    keys = iter(jax.random.split(key, 4096))

    def nrm(shape, std=0.02):
        return std * jax.random.normal(next(keys), shape, jnp.float32)

    C0 = cfg["embed_dim"]
    params = {
        "patch_embed": dict(
            w=nrm((3 * cfg["patch"] ** 2, C0)),
            b=jnp.zeros((C0,), jnp.float32),
            ln_g=jnp.ones((C0,), jnp.float32),
            ln_b=jnp.zeros((C0,), jnp.float32),
        )
    }
    stages = []
    for si, depth in enumerate(cfg["depths"]):
        dim = C0 * (2 ** si)
        heads = cfg["heads"][si]
        st = {}
        if si > 0:
            st["downsample"] = dict(
                red_w=nrm((2 * dim, dim)),  # 4*prev_dim == 2*dim
                ln_g=jnp.ones((dim,), jnp.float32),
                ln_b=jnp.zeros((dim,), jnp.float32),
            )
        blocks = []
        for _ in range(depth):
            blocks.append(dict(
                qkv_w=nrm((dim, 3 * dim)),
                q_bias=jnp.zeros((dim,), jnp.float32),
                v_bias=jnp.zeros((dim,), jnp.float32),
                logit_scale=jnp.full((heads,), math.log(10.0), jnp.float32),
                cpb_w1=nrm((2, 512)),
                cpb_b1=jnp.zeros((512,), jnp.float32),
                cpb_w2=nrm((512, heads)),
                proj_w=nrm((dim, dim)),
                proj_b=jnp.zeros((dim,), jnp.float32),
                norm1_g=jnp.ones((dim,), jnp.float32),
                norm1_b=jnp.zeros((dim,), jnp.float32),
                fc1_w=nrm((dim, 4 * dim)),
                fc1_b=jnp.zeros((4 * dim,), jnp.float32),
                fc2_w=nrm((4 * dim, dim)),
                fc2_b=jnp.zeros((dim,), jnp.float32),
                norm2_g=jnp.ones((dim,), jnp.float32),
                norm2_b=jnp.zeros((dim,), jnp.float32),
            ))
        st["blocks"] = blocks
        stages.append(st)
    params["stages"] = stages
    return params


if __name__ == "__main__":
    # Scaled-down config (real swinv2_small: dim=96, depths=(2,2,18,2), window=8, img=768)
    cfg = dict(patch=4, window=4, embed_dim=16, depths=(2, 2, 2, 2), heads=(1, 2, 4, 8))
    key = jax.random.PRNGKey(0)
    kx, kp = jax.random.split(key)
    x = jax.random.normal(kx, (2, 3, 64, 64), jnp.float32)  # NCHW input
    params = init_params(kp, cfg)
    params = cast_matmul_weights(params)          # one-time bf16 weight conversion
    derived = prepare_derived(params, cfg, (64, 64))  # once-per-shape precompute

    fmaps = backbone_forward(x, params, cfg, derived)
    fmaps = jax.block_until_ready(fmaps)

    expected = [(2, 16, 16, 16), (2, 32, 8, 8), (2, 64, 4, 4), (2, 128, 2, 2)]
    assert [tuple(f.shape) for f in fmaps] == expected, [f.shape for f in fmaps]
    assert all(bool(jnp.all(jnp.isfinite(f))) for f in fmaps)
    print("KERNEL_OK")
</pallas_src>

<mosaic_0001>
module attributes {stable_mosaic.version = 11 : i64} {
  func.func @_linear_small_kernel(%arg0: i32, %arg1: memref<256x48xbf16, #tpu.memory_space<vmem>>, %arg2: memref<48x16xbf16, #tpu.memory_space<vmem>>, %arg3: memref<1x16xf32, #tpu.memory_space<vmem>>, %arg4: memref<256x16xbf16, #tpu.memory_space<vmem>>) attributes {dimension_semantics = [#tpu.dimension_semantics<parallel>], iteration_bounds = array<i64: 2>, scalar_prefetch = 0 : i64, scratch_operands = 0 : i64, tpu.core_type = #tpu.core_type<tc>, window_params = [{transform_indices = @transform_0, window_bounds = array<i64: 256, 48>}, {pipeline_mode = #tpu.pipeline_mode<synchronous>, transform_indices = @transform_1, window_bounds = array<i64: 48, 16>}, {pipeline_mode = #tpu.pipeline_mode<synchronous>, transform_indices = @transform_2, window_bounds = array<i64: 1, 16>}, {transform_indices = @transform_3, window_bounds = array<i64: 256, 16>}]} {
    %c0 = arith.constant 0 : index
    %c0_0 = arith.constant 0 : index
    %0 = vector.load %arg1[%c0, %c0_0] : memref<256x48xbf16, #tpu.memory_space<vmem>>, vector<256x48xbf16>
    %c0_1 = arith.constant 0 : index
    %c0_2 = arith.constant 0 : index
    %1 = vector.load %arg2[%c0_1, %c0_2] : memref<48x16xbf16, #tpu.memory_space<vmem>>, vector<48x16xbf16>
    %cst = arith.constant dense<0.000000e+00> : vector<256x16xf32>
    %2 = tpu.matmul %0, %1, %cst {dimension_numbers = #tpu.dot_dimension_numbers<[1], [0], [0], [1], [0, 0, 1, 1], [], []>} : vector<256x48xbf16>, vector<48x16xbf16>, vector<256x16xf32> -> vector<256x16xf32>
    %c0_3 = arith.constant 0 : index
    %c0_4 = arith.constant 0 : index
    %3 = vector.load %arg3[%c0_3, %c0_4] : memref<1x16xf32, #tpu.memory_space<vmem>>, vector<1x16xf32>
    %4 = vector.broadcast %3 : vector<1x16xf32> to vector<256x16xf32>
    %5 = arith.addf %2, %4 : vector<256x16xf32>
    %6 = arith.truncf %5 : vector<256x16xf32> to vector<256x16xbf16>
    %c0_5 = arith.constant 0 : index
    %c0_6 = arith.constant 0 : index
    %7 = vector.load %arg4[%c0_5, %c0_6] : memref<256x16xbf16, #tpu.memory_space<vmem>>, vector<256x16xbf16>
    tpu.vector_store %arg4[%c0_5, %c0_6], %6 {strides = array<i32>} : memref<256x16xbf16, #tpu.memory_space<vmem>>, vector<256x16xbf16>,
    return
  }
  func.func @transform_0(%arg0: i32) -> (i32, i32) {
    %c0_i32 = arith.constant 0 : i32
    %c0_i32_0 = arith.constant 0 : i32
    return %arg0, %c0_i32 : i32, i32
  }
  func.func @transform_1(%arg0: i32) -> (i32, i32) {
    %c0_i32 = arith.constant 0 : i32
    %c0_i32_0 = arith.constant 0 : i32
    %c0_i32_1 = arith.constant 0 : i32
    return %c0_i32, %c0_i32_0 : i32, i32
  }
  func.func @transform_2(%arg0: i32) -> (i32, i32) {
    %c0_i32 = arith.constant 0 : i32
    %c0_i32_0 = arith.constant 0 : i32
    %c0_i32_1 = arith.constant 0 : i32
    return %c0_i32, %c0_i32_0 : i32, i32
  }
  func.func @transform_3(%arg0: i32) -> (i32, i32) {
    %c0_i32 = arith.constant 0 : i32
    %c0_i32_0 = arith.constant 0 : i32
    return %arg0, %c0_i32 : i32, i32
  }
}

</mosaic_0001>

<bundles_post_ra>
// kernel: tpu_custom_call.1
= control target key start
LH: loop header
LB: loop body
LE: loop exit
PB: predicated region body
PF: predicated region fallthrough
CT: control target
= control target key end

     0   :  { %s974_s12 = smov 0   ;;  %s1144_s0 = inlined_call_operand.vmem [shape: bf16[512,48], index: 0, kind: input, shape index: {}]   ;;  %s1145_s1 = inlined_call_operand.vmem [shape: bf16[48,16], index: 1, kind: input, shape index: {}]   ;;  %s1146_s2 = inlined_call_operand.vmem [shape: f32[1,16], index: 2, kind: input, shape index: {}]   ;;  %s1147_s3 = inlined_call_operand.vmem [shape: bf16[512,16], index: 3, kind: output, shape index: {}]  }
   0x1 LB: > { %s745_s13 = sadd.s32 4294967295, %s952_s12   ;;  %p749_p0 = scmp.ge.s32.totalorder %s952_s12, 1  ;;  %s952_s12 = sphi %s974_s12, %s13_s12  }
   0x2   : > { %p138_p1 = scmp.lt.s32.totalorder %s952_s12, 3 }
   0x4   : > { %p139_p2 = pnand %p749_p0, %p138_p1 }
   0x5   : > { %v927_v0 = vld [vmem:[%s1145_s1] sm:$0xff] (!%p139_p2)   ;;  %s750_s16 = sshll.u32 (!%p139_p2), %s745_s13, 5  ;;  %v928_v1 = vld [vmem:[%s1145_s1 + $0x8] sm:$0xff] (!%p139_p2)   ;;  %v929_v2 = vld [vmem:[%s1145_s1 + $0x10] sm:$0xff] (!%p139_p2)   ;;  %vm318_vm0 = vcmask (!%p139_p2), 392192   ;;  %vm656_vm1 = vcmask (!%p139_p2), 125952  }
   0x6   : > { %142 = sbr.rel (%p139_p2) target bundleno = 263 (0x107), region = 32  ;;  %p163_p3 = scmp.lt.s32.totalorder (!%p139_p2), %s750_s16, 63  ;;  %875 = vmatprep.subr.bf16.mxu0 (!%p139_p2), %v927_v0  ;;  %913 = vmatprep.subr.bf16.mxu1 (!%p139_p2), %v927_v0  ;;  %v1036_v19 = vld [vmem:[%s1146_s2] ss:$0 sm:$0xff] (!%p139_p2) }
   0x7   : > { %876 = vmatpush3.bf16.msra.mxu0 (!%p139_p2), %v927_v0  ;;  %916 = vmatpush3.bf16.msra.mxu1 (!%p139_p2), %v927_v0 }
   0x8   : > { %877 = vmatprep.subr.bf16.mxu0 (!%p139_p2), %v928_v1  ;;  %914 = vmatprep.subr.bf16.mxu1 (!%p139_p2), %v928_v1 }
   0xb   : > { %878 = vmatpush3.bf16.msra.mxu0 (!%p139_p2), %v928_v1  ;;  %917 = vmatpush3.bf16.msra.mxu1 (!%p139_p2), %v928_v1 }
   0xc   : > { %879 = vmatprep.subr.bf16.mxu0 (!%p139_p2), %v929_v2  ;;  %915 = vmatprep.subr.bf16.mxu1 (!%p139_p2), %v929_v2 }
   0xd   : > { %s1149_s16 = smov (!%p163_p3, %s750_s16), 63 }
   0xe   : > { %s751_s21 = sshll.u32 %s1149_s16, 2 }
   0xf   : > { %s999_s24 = scalar_lea.vmem %s1144_s0, %s751_s21  ;;  %880 = vmatpush3.bf16.msra.mxu0 %v929_v2  ;;  %918 = vmatpush3.bf16.msra.mxu1 %v929_v2  ;;  %s1045_s29 = scalar_lea.vmem %s1147_s3, %s751_s21 }
  0x10   : > { %v930_v3 = vld [vmem:[%s999_s24] sm:$0xff]   ;;  %v932_v5 = vld [vmem:[%s999_s24 + $0x8] sm:$0xff]   ;;  %v934_v7 = vld [vmem:[%s999_s24 + $0x10] sm:$0xff]  }
  0x11   : > { %v931_v4 = vld [vmem:[%s999_s24 + $0x40] sm:$0xff]   ;;  %881 = vmatprep.mubr.msk.bf16.mxu0 %vm318_vm0, %v930_v3  ;;  %v933_v6 = vld [vmem:[%s999_s24 + $0x48] sm:$0xff]   ;;  %v935_v8 = vld [vmem:[%s999_s24 + $0x50] sm:$0xff]  }
  0x12   : > { %897 = vmatprep.mubr.msk.bf16.mxu1 %vm318_vm0, %v931_v4  ;;  %882 = vmatmul.mubr.msk.bf16.vlgmr.msra.gmra.mrb[0].mxu0 %vm318_vm0, %v932_v5  ;;  %v936_v9 = vld [vmem:[%s999_s24 + $0x18] sm:$0xff]   ;;  %v938_v11 = vld [vmem:[%s999_s24 + $0x20] sm:$0xff]   ;;  %v940_v13 = vld [vmem:[%s999_s24 + $0x28] sm:$0xff]  }
  0x13   : > { %898 = vmatmul.mubr.msk.bf16.vlgmr.msra.gmra.mrb[0].mxu1 %vm318_vm0, %v933_v6  ;;  %885 = vmatprep.mubr.msk.bf16.mxu0 %vm318_vm0, %v934_v7  ;;  %v937_v10 = vld [vmem:[%s999_s24 + $0x58] sm:$0xff]   ;;  %v939_v12 = vld [vmem:[%s999_s24 + $0x60] sm:$0xff]   ;;  %v941_v14 = vld [vmem:[%s999_s24 + $0x68] sm:$0xff]  }
  0x14   : > { %901 = vmatprep.mubr.msk.bf16.mxu1 %vm318_vm0, %v935_v8  ;;  %v942_v15 = vld [vmem:[%s999_s24 + $0x30] sm:$0xff]   ;;  %v944_v17 = vld [vmem:[%s999_s24 + $0x38] sm:$0xff]  }
  0x15   : > { %v943_v16 = vld [vmem:[%s999_s24 + $0x70] sm:$0xff]   ;;  %v945_v18 = vld [vmem:[%s999_s24 + $0x78] sm:$0xff]  }
  0x1a   : > { %886 = vmatmul.mubr.msk.bf16.gmra.mrb[4].mxu0 %vm318_vm0, %v936_v9 }
  0x1b   : > { %902 = vmatmul.mubr.msk.bf16.gmra.mrb[4].mxu1 %vm318_vm0, %v937_v10  ;;  %889 = vmatprep.mubr.msk.bf16.mxu0 %vm318_vm0, %v938_v11 }
  0x1c   : > { %905 = vmatprep.mubr.msk.bf16.mxu1 %vm318_vm0, %v939_v12 }
  0x22   : > { %890 = vmatmul.mubr.msk.bf16.gmra.mrb[8].mxu0 %vm318_vm0, %v940_v13 }
  0x23   : > { %906 = vmatmul.mubr.msk.bf16.gmra.mrb[8].mxu1 %vm318_vm0, %v941_v14  ;;  %893 = vmatprep.mubr.msk.bf16.mxu0 %vm318_vm0, %v942_v15 }
  0x24   : > { %909 = vmatprep.mubr.msk.bf16.mxu1 %vm318_vm0, %v943_v16 }
  0x2a   : > { %894 = vmatmul.mubr.msk.bf16.gmra.mrb[12].mxu0 %vm318_vm0, %v944_v17 }
  0x2b   : > { %910 = vmatmul.mubr.msk.bf16.gmra.mrb[12].mxu1 %vm318_vm0, %v945_v18 }
  0xe5   : > { %v883_v20 = vpop.f32.mrb[0].mxu0 }
  0xe6   : > { %v899_v21 = vpop.f32.mrb[0].mxu1  ;;  %v410_v22 = vadd.f32 %v883_v20, %v1036_v19  ;;  %v401_v24 = vpop.f32.mrb[1].mxu0 }
  0xe7   : > { %v474_v23 = vadd.f32 %v899_v21, %v1036_v19  ;;  %v465_v25 = vpop.f32.mrb[1].mxu1  ;;  %v402_v26 = vadd.f32 %v1036_v19, %v401_v24  ;;  %v884_v28 = vpop.f32.mrb[2].mxu0 }
  0xe8   : > { %v466_v27 = vadd.f32 %v1036_v19, %v465_v25  ;;  %v900_v29 = vpop.f32.mrb[2].mxu1  ;;  %v826_v30 = vpack.c.bf16 %v410_v22, %v410_v22  ;;  %v413_v32 = vadd.f32 %v884_v28, %v1036_v19  ;;  %v404_v34 = vpop.f32.mrb[3].mxu0 }
  0xe9   : > { %v842_v31 = vpack.c.bf16 %v474_v23, %v474_v23  ;;  %v477_v33 = vadd.f32 %v900_v29, %v1036_v19  ;;  %v468_v35 = vpop.f32.mrb[3].mxu1  ;;  %v824_v36 = vpack.c.bf16 %v402_v26, %v402_v26  ;;  %v405_v38 = vadd.f32 %v1036_v19, %v404_v34 }
  0xea   : > { %v840_v37 = vpack.c.bf16 %v466_v27, %v466_v27  ;;  %v469_v39 = vadd.f32 %v1036_v19, %v468_v35  ;;  %659 = vst.msk [vmem:[%s1045_s29 + $0x8] sm:$0xf] %vm656_vm1, %v826_v30  ;;  %v827_v40 = vpack.c.bf16 %v413_v32, %v413_v32 }
  0xeb   : > { %675 = vst.msk [vmem:[%s1045_s29 + $0x48] sm:$0xf] %vm656_vm1, %v842_v31  ;;  %v843_v41 = vpack.c.bf16 %v477_v33, %v477_v33  ;;  %657 = vst.msk [vmem:[%s1045_s29] sm:$0xf] %vm656_vm1, %v824_v36  ;;  %v825_v42 = vpack.c.bf16 %v405_v38, %v405_v38 }
  0xec   : > { %673 = vst.msk [vmem:[%s1045_s29 + $0x40] sm:$0xf] %vm656_vm1, %v840_v37  ;;  %v841_v43 = vpack.c.bf16 %v469_v39, %v469_v39  ;;  %660 = vst.msk [vmem:[%s1045_s29 + $0xc] sm:$0xf] %vm656_vm1, %v827_v40 }
  0xed   : > { %676 = vst.msk [vmem:[%s1045_s29 + $0x4c] sm:$0xf] %vm656_vm1, %v843_v41  ;;  %658 = vst.msk [vmem:[%s1045_s29 + $0x4] sm:$0xf] %vm656_vm1, %v825_v42  ;;  %v887_v44 = vpop.f32.mrb[4].mxu0 }
  0xee   : > { %674 = vst.msk [vmem:[%s1045_s29 + $0x44] sm:$0xf] %vm656_vm1, %v841_v43  ;;  %v903_v45 = vpop.f32.mrb[4].mxu1  ;;  %v426_v46 = vadd.f32 %v887_v44, %v1036_v19  ;;  %v417_v48 = vpop.f32.mrb[5].mxu0 }
  0xef   : > { %v490_v47 = vadd.f32 %v903_v45, %v1036_v19  ;;  %v481_v49 = vpop.f32.mrb[5].mxu1  ;;  %v418_v50 = vadd.f32 %v1036_v19, %v417_v48  ;;  %v888_v52 = vpop.f32.mrb[6].mxu0 }
  0xf0   : > { %v482_v51 = vadd.f32 %v1036_v19, %v481_v49  ;;  %v904_v53 = vpop.f32.mrb[6].mxu1  ;;  %v830_v54 = vpack.c.bf16 %v426_v46, %v426_v46  ;;  %v429_v56 = vadd.f32 %v888_v52, %v1036_v19  ;;  %v420_v58 = vpop.f32.mrb[7].mxu0 }
  0xf1   : > { %v846_v55 = vpack.c.bf16 %v490_v47, %v490_v47  ;;  %v493_v57 = vadd.f32 %v904_v53, %v1036_v19  ;;  %v484_v59 = vpop.f32.mrb[7].mxu1  ;;  %v828_v60 = vpack.c.bf16 %v418_v50, %v418_v50  ;;  %v421_v62 = vadd.f32 %v1036_v19, %v420_v58 }
  0xf2   : > { %v844_v61 = vpack.c.bf16 %v482_v51, %v482_v51  ;;  %v485_v63 = vadd.f32 %v1036_v19, %v484_v59  ;;  %663 = vst.msk [vmem:[%s1045_s29 + $0x18] sm:$0xf] %vm656_vm1, %v830_v54  ;;  %v831_v0 = vpack.c.bf16 %v429_v56, %v429_v56 }
  0xf3   : > { %679 = vst.msk [vmem:[%s1045_s29 + $0x58] sm:$0xf] %vm656_vm1, %v846_v55  ;;  %v847_v1 = vpack.c.bf16 %v493_v57, %v493_v57  ;;  %661 = vst.msk [vmem:[%s1045_s29 + $0x10] sm:$0xf] %vm656_vm1, %v828_v60  ;;  %v829_v2 = vpack.c.bf16 %v421_v62, %v421_v62 }
  0xf4   : > { %677 = vst.msk [vmem:[%s1045_s29 + $0x50] sm:$0xf] %vm656_vm1, %v844_v61  ;;  %v845_v3 = vpack.c.bf16 %v485_v63, %v485_v63  ;;  %664 = vst.msk [vmem:[%s1045_s29 + $0x1c] sm:$0xf] %vm656_vm1, %v831_v0 }
  0xf5   : > { %680 = vst.msk [vmem:[%s1045_s29 + $0x5c] sm:$0xf] %vm656_vm1, %v847_v1  ;;  %662 = vst.msk [vmem:[%s1045_s29 + $0x14] sm:$0xf] %vm656_vm1, %v829_v2  ;;  %v891_v4 = vpop.f32.mrb[8].mxu0 }
  0xf6   : > { %678 = vst.msk [vmem:[%s1045_s29 + $0x54] sm:$0xf] %vm656_vm1, %v845_v3  ;;  %v907_v5 = vpop.f32.mrb[8].mxu1  ;;  %v442_v6 = vadd.f32 %v891_v4, %v1036_v19  ;;  %v433_v8 = vpop.f32.mrb[9].mxu0 }
  0xf7   : > { %v506_v7 = vadd.f32 %v907_v5, %v1036_v19  ;;  %v497_v9 = vpop.f32.mrb[9].mxu1  ;;  %v434_v10 = vadd.f32 %v1036_v19, %v433_v8  ;;  %v892_v12 = vpop.f32.mrb[10].mxu0 }
  0xf8   : > { %v498_v11 = vadd.f32 %v1036_v19, %v497_v9  ;;  %v908_v13 = vpop.f32.mrb[10].mxu1  ;;  %v834_v14 = vpack.c.bf16 %v442_v6, %v442_v6  ;;  %v445_v16 = vadd.f32 %v892_v12, %v1036_v19  ;;  %v436_v18 = vpop.f32.mrb[11].mxu0 }
  0xf9   : > { %v850_v15 = vpack.c.bf16 %v506_v7, %v506_v7  ;;  %v509_v17 = vadd.f32 %v908_v13, %v1036_v19  ;;  %v500_v20 = vpop.f32.mrb[11].mxu1  ;;  %v832_v21 = vpack.c.bf16 %v434_v10, %v434_v10  ;;  %v437_v23 = vadd.f32 %v1036_v19, %v436_v18 }
  0xfa   : > { %v848_v22 = vpack.c.bf16 %v498_v11, %v498_v11  ;;  %v501_v24 = vadd.f32 %v1036_v19, %v500_v20  ;;  %667 = vst.msk [vmem:[%s1045_s29 + $0x28] sm:$0xf] %vm656_vm1, %v834_v14  ;;  %v835_v25 = vpack.c.bf16 %v445_v16, %v445_v16 }
  0xfb   : > { %683 = vst.msk [vmem:[%s1045_s29 + $0x68] sm:$0xf] %vm656_vm1, %v850_v15  ;;  %v851_v26 = vpack.c.bf16 %v509_v17, %v509_v17  ;;  %665 = vst.msk [vmem:[%s1045_s29 + $0x20] sm:$0xf] %vm656_vm1, %v832_v21  ;;  %v833_v27 = vpack.c.bf16 %v437_v23, %v437_v23 }
  0xfc   : > { %681 = vst.msk [vmem:[%s1045_s29 + $0x60] sm:$0xf] %vm656_vm1, %v848_v22  ;;  %v849_v28 = vpack.c.bf16 %v501_v24, %v501_v24  ;;  %668 = vst.msk [vmem:[%s1045_s29 + $0x2c] sm:$0xf] %vm656_vm1, %v835_v25 }
  0xfd   : > { %684 = vst.msk [vmem:[%s1045_s29 + $0x6c] sm:$0xf] %vm656_vm1, %v851_v26  ;;  %666 = vst.msk [vmem:[%s1045_s29 + $0x24] sm:$0xf] %vm656_vm1, %v833_v27  ;;  %v895_v29 = vpop.f32.mrb[12].mxu0 }
  0xfe   : > { %682 = vst.msk [vmem:[%s1045_s29 + $0x64] sm:$0xf] %vm656_vm1, %v849_v28  ;;  %v911_v30 = vpop.f32.mrb[12].mxu1  ;;  %v458_v31 = vadd.f32 %v895_v29, %v1036_v19  ;;  %v449_v33 = vpop.f32.mrb[13].mxu0 }
  0xff   : > { %v522_v32 = vadd.f32 %v911_v30, %v1036_v19  ;;  %v513_v34 = vpop.f32.mrb[13].mxu1  ;;  %v450_v35 = vadd.f32 %v1036_v19, %v449_v33  ;;  %v896_v37 = vpop.f32.mrb[14].mxu0 }
 0x100   : > { %v514_v36 = vadd.f32 %v1036_v19, %v513_v34  ;;  %v912_v38 = vpop.f32.mrb[14].mxu1  ;;  %v838_v39 = vpack.c.bf16 %v458_v31, %v458_v31  ;;  %v461_v41 = vadd.f32 %v896_v37, %v1036_v19  ;;  %v452_v43 = vpop.f32.mrb[15].mxu0 }
 0x101   : > { %v854_v40 = vpack.c.bf16 %v522_v32, %v522_v32  ;;  %v525_v42 = vadd.f32 %v912_v38, %v1036_v19  ;;  %v516_v44 = vpop.f32.mrb[15].mxu1  ;;  %v836_v45 = vpack.c.bf16 %v450_v35, %v450_v35  ;;  %v453_v47 = vadd.f32 %v1036_v19, %v452_v43 }
 0x102   : > { %v852_v46 = vpack.c.bf16 %v514_v36, %v514_v36  ;;  %v517_v48 = vadd.f32 %v1036_v19, %v516_v44  ;;  %671 = vst.msk [vmem:[%s1045_s29 + $0x38] sm:$0xf] %vm656_vm1, %v838_v39  ;;  %v839_v49 = vpack.c.bf16 %v461_v41, %v461_v41 }
 0x103   : > { %687 = vst.msk [vmem:[%s1045_s29 + $0x78] sm:$0xf] %vm656_vm1, %v854_v40  ;;  %v855_v50 = vpack.c.bf16 %v525_v42, %v525_v42  ;;  %669 = vst.msk [vmem:[%s1045_s29 + $0x30] sm:$0xf] %vm656_vm1, %v836_v45  ;;  %v837_v51 = vpack.c.bf16 %v453_v47, %v453_v47 }
 0x104   : > { %685 = vst.msk [vmem:[%s1045_s29 + $0x70] sm:$0xf] %vm656_vm1, %v852_v46  ;;  %v853_v52 = vpack.c.bf16 %v517_v48, %v517_v48  ;;  %672 = vst.msk [vmem:[%s1045_s29 + $0x3c] sm:$0xf] %vm656_vm1, %v839_v49 }
 0x105   : > { %688 = vst.msk [vmem:[%s1045_s29 + $0x7c] sm:$0xf] %vm656_vm1, %v855_v50  ;;  %670 = vst.msk [vmem:[%s1045_s29 + $0x34] sm:$0xf] %vm656_vm1, %v837_v51 }
 0x106   : > { %686 = vst.msk [vmem:[%s1045_s29 + $0x74] sm:$0xf] %vm656_vm1, %v853_v52 }
 0x107 PF: > { %s13_s12 = sadd.s32 1, %s952_s12  }
 0x108   : > { %p10_p4 = scmp.ge.s32.totalorder %s13_s12, 4  }
 0x10a   :  { %12 = sbr.rel (!%p10_p4) target bundleno = 1 (0x1), region = 62 }

</bundles_post_ra>
